<compile_context>
chip_gen: v5e
topology: v5e:2x2
jax: 0.10.0
libtpu: 0.0.40
codegen_flags: <defaults>
</compile_context>

<pallas_src>
import functools
import math

import jax
import jax.numpy as jnp
from jax.experimental import pallas as pl
from jax.experimental.pallas import tpu as pltpu


def _attention_block_kernel(x_ref, wqkv_ref, bqkv_ref, wo_ref, bo_ref,
                            gamma_ref, beta_ref, o_ref, *, num_heads):
    Bt, S, E = x_ref.shape
    H = num_heads
    Dh = E // H
    cdt = wqkv_ref.dtype                  # bf16 compute dtype for the MXU

    wqkv = wqkv_ref[...]                  # (H, E, 3*Dh) bf16, q pre-scaled
    bqkv = bqkv_ref[...]                  # (H, 1, 3*Dh) f32 (q bias pre-scaled)
    wo = wo_ref[...]                      # (H, Dh, E)   bf16
    bo = bo_ref[...]                      # (1, E)       f32
    gamma = gamma_ref[...]                # (1, E)       f32
    beta = beta_ref[...]                  # (1, E)       f32

    # Static loop over the Bt batch rows in this block.  Bt > 1 only when
    # S*E is small (byte-target heuristic in the wrapper), so the unroll stays
    # tiny; for realistic shapes Bt == 1 and there is no unroll.
    for bt in range(Bt):
        xb = x_ref[bt]                                        # (S, E) f32
        xh = jnp.broadcast_to(xb.astype(cdt), (H, S, E))      # (H, S, E) bf16

        # ---- in-projection, head-batched: (H,S,E) @ (H,E,3Dh) -> (H,S,3Dh) ----
        qkv = jnp.einsum('hse,hef->hsf', xh, wqkv,
                         preferred_element_type=jnp.float32) + bqkv
        q = qkv[:, :, 0 * Dh:1 * Dh].astype(cdt)              # already scaled
        k = qkv[:, :, 1 * Dh:2 * Dh].astype(cdt)
        v = qkv[:, :, 2 * Dh:3 * Dh].astype(cdt)

        # ---- scaled dot-product attention, batched over heads ----
        scores = jnp.einsum('hqd,hkd->hqk', q, k,
                            preferred_element_type=jnp.float32)   # (H, S, S)
        m = jnp.max(scores, axis=-1, keepdims=True)
        p = jnp.exp(scores - m)
        denom = jnp.sum(p, axis=-1, keepdims=True)                # (H, S, 1)

        ctx = jnp.einsum('hqk,hkd->hqd', p.astype(cdt), v,
                         preferred_element_type=jnp.float32)      # (H, S, Dh)
        # Normalization deferred to the smaller tensor; EUP approx reciprocal.
        ctx = ctx * pl.reciprocal(denom, approx=True)

        # ---- out-projection: per-head (S,Dh)@(Dh,E), reduce over heads ----
        out_h = jnp.einsum('hsd,hde->hse', ctx.astype(cdt), wo,
                           preferred_element_type=jnp.float32)    # (H, S, E)
        attn_out = jnp.sum(out_h, axis=0) + bo                    # (S, E)

        # ---- residual + LayerNorm (f32) ----
        y = xb + attn_out
        mean = jnp.mean(y, axis=-1, keepdims=True)
        c = y - mean
        var = jnp.mean(c * c, axis=-1, keepdims=True)
        out = c * jax.lax.rsqrt(var + 1e-5) * gamma + beta
        o_ref[bt] = out.astype(o_ref.dtype)


def _pick_batch_tile(batch, seq, embed, itemsize, target_bytes=1 << 20,
                     max_tile=8):
    """Largest divisor of `batch` whose (Bt, S, E) slab stays under the target."""
    per_row = max(seq * embed * itemsize, 1)
    cap = max(1, min(max_tile, target_bytes // per_row))
    bt = 1
    for d in range(1, batch + 1):
        if batch % d == 0 and d <= cap:
            bt = d
    return bt


def attention_block(x, params, num_heads, *, compute_dtype=jnp.bfloat16):
    """x: (B, S, E) float32.  params: dict (see init_params)."""
    B, S, E = x.shape
    H = num_heads
    if E % H != 0:
        raise ValueError(f"embed_dim={E} must be divisible by num_heads={H}")
    Dh = E // H
    scale = 1.0 / math.sqrt(Dh)
    f32 = jnp.float32

    w_in = params["in_proj_weight"].astype(f32)     # (3E, E): rows [Wq; Wk; Wv]
    b_in = params["in_proj_bias"].astype(f32)       # (3E,)
    w_out = params["out_proj_weight"].astype(f32)   # (E, E)
    b_out = params["out_proj_bias"].astype(f32)     # (E,)

    # ---- host-side per-head weight layout (pre-transposed, q pre-scaled, bf16) ----
    def head_layout(w, s=1.0):                      # (E, E) -> (H, E, Dh)
        return jnp.transpose(w.reshape(H, Dh, E), (0, 2, 1)) * s

    wq = head_layout(w_in[0 * E:1 * E], scale)
    wk = head_layout(w_in[1 * E:2 * E])
    wv = head_layout(w_in[2 * E:3 * E])
    wqkv_heads = jnp.concatenate([wq, wk, wv], axis=-1).astype(compute_dtype)  # (H,E,3Dh)

    bq = (b_in[0 * E:1 * E] * scale).reshape(H, 1, Dh)
    bk = b_in[1 * E:2 * E].reshape(H, 1, Dh)
    bv = b_in[2 * E:3 * E].reshape(H, 1, Dh)
    bqkv_heads = jnp.concatenate([bq, bk, bv], axis=-1)                        # (H,1,3Dh) f32

    wo_heads = w_out.T.reshape(H, Dh, E).astype(compute_dtype)                 # (H,Dh,E)
    bo = b_out.reshape(1, E)
    gamma = params["ln_weight"].astype(f32).reshape(1, E)
    beta = params["ln_bias"].astype(f32).reshape(1, E)

    # ---- batch tiling: bigger, fewer blocks to amortize per-step overhead ----
    bt = _pick_batch_tile(B, S, E, x.dtype.itemsize)
    grid = (B // bt,)

    # ---- VMEM budget + cost estimate ----
    cbytes = jnp.dtype(compute_dtype).itemsize
    weight_bytes = ((wqkv_heads.size + wo_heads.size) * cbytes
                    + (bqkv_heads.size + bo.size + gamma.size + beta.size) * 4)
    block_bytes = bt * S * E * x.dtype.itemsize
    inter_bytes = (H * S * E * cbytes          # broadcast x
                   + H * S * 3 * Dh * 4        # qkv
                   + 2 * H * S * S * 4         # scores + p
                   + H * S * Dh * 4            # ctx
                   + H * S * E * 4)            # per-head out
    est = 2 * 2 * block_bytes + 2 * weight_bytes + inter_bytes
    vmem_limit = int(min(100 * 2 ** 20, max(32 * 2 ** 20, 2 * est)))

    cost = pl.CostEstimate(
        flops=int(2 * B * S * E * (4 * E + 2 * S)),
        transcendentals=int(B * H * S * S),
        bytes_accessed=int(2 * B * S * E * x.dtype.itemsize + weight_bytes))

    kernel = functools.partial(_attention_block_kernel, num_heads=H)

    def const_spec(arr):  # full-array block, constant index map (weights etc.)
        return pl.BlockSpec(arr.shape, lambda b: (0,) * arr.ndim)

    return pl.pallas_call(
        kernel,
        out_shape=jax.ShapeDtypeStruct((B, S, E), x.dtype),
        grid_spec=pltpu.PrefetchScalarGridSpec(
            num_scalar_prefetch=0,
            grid=grid,
            in_specs=[
                pl.BlockSpec((bt, S, E), lambda b: (b, 0, 0)),   # x slab
                const_spec(wqkv_heads),
                const_spec(bqkv_heads),
                const_spec(wo_heads),
                const_spec(bo),
                const_spec(gamma),
                const_spec(beta),
            ],
            out_specs=pl.BlockSpec((bt, S, E), lambda b: (b, 0, 0)),
        ),
        compiler_params=pltpu.CompilerParams(
            dimension_semantics=("parallel",),
            vmem_limit_bytes=vmem_limit),
        cost_estimate=cost,
    )(x, wqkv_heads, bqkv_heads, wo_heads, bo, gamma, beta)


def init_params(key, embed_dim):
    """Synthetic params with the same shapes as nn.MultiheadAttention + LayerNorm."""
    k1, k2, k3, k4 = jax.random.split(key, 4)
    E = embed_dim
    s = 1.0 / math.sqrt(E)
    return {
        "in_proj_weight": jax.random.uniform(k1, (3 * E, E), jnp.float32, -s, s),
        "in_proj_bias": jax.random.uniform(k2, (3 * E,), jnp.float32, -s, s),
        "out_proj_weight": jax.random.uniform(k3, (E, E), jnp.float32, -s, s),
        "out_proj_bias": jax.random.uniform(k4, (E,), jnp.float32, -s, s),
        "ln_weight": jnp.ones((E,), jnp.float32),
        "ln_bias": jnp.zeros((E,), jnp.float32),
    }


def _reference(x, params, num_heads):
    """Pure-JAX f32 reference of the eval-mode AttentionBlock forward."""
    B, S, E = x.shape
    H = num_heads
    Dh = E // H
    qkv = jnp.einsum('bse,fe->bsf', x, params["in_proj_weight"]) + params["in_proj_bias"]
    q, k, v = qkv[..., :E], qkv[..., E:2 * E], qkv[..., 2 * E:]

    def split(t):
        return t.reshape(B, S, H, Dh).transpose(0, 2, 1, 3)   # (B,H,S,Dh)

    q, k, v = split(q), split(k), split(v)
    scores = jnp.einsum('bhqd,bhkd->bhqk', q, k) / math.sqrt(Dh)
    p = jax.nn.softmax(scores, axis=-1)
    ctx = jnp.einsum('bhqk,bhkd->bhqd', p, v)
    ctx = ctx.transpose(0, 2, 1, 3).reshape(B, S, E)
    attn = jnp.einsum('bse,fe->bsf', ctx, params["out_proj_weight"]) + params["out_proj_bias"]
    y = x + attn
    mean = y.mean(-1, keepdims=True)
    var = ((y - mean) ** 2).mean(-1, keepdims=True)
    return (y - mean) * jax.lax.rsqrt(var + 1e-5) * params["ln_weight"] + params["ln_bias"]


if __name__ == "__main__":
    B, S, E, H = 2, 8, 32, 4   # batch, seq, embed_dim, num_heads

    key = jax.random.PRNGKey(0)
    kx, kp = jax.random.split(key)
    x = jax.random.normal(kx, (B, S, E), jnp.float32)
    params = init_params(kp, E)

    out = attention_block(x, params, num_heads=H)
    jax.block_until_ready(out)
    assert out.shape == (B, S, E) and out.dtype == jnp.float32

    ref = _reference(x, params, H)
    err = float(jnp.max(jnp.abs(out - ref)))
    # bf16 matmul inputs + approx reciprocal -> loose but meaningful tolerance.
    assert err < 1e-1, f"max abs error vs reference: {err}"
    print("KERNEL_OK")
</pallas_src>

<mosaic_0001>
module attributes {stable_mosaic.version = 11 : i64} {
  func.func @_attention_block_kernel(%arg0: i32, %arg1: memref<2x8x32xf32, #tpu.memory_space<vmem>>, %arg2: memref<4x32x24xbf16, #tpu.memory_space<vmem>>, %arg3: memref<4x1x24xf32, #tpu.memory_space<vmem>>, %arg4: memref<4x8x32xbf16, #tpu.memory_space<vmem>>, %arg5: memref<1x32xf32, #tpu.memory_space<vmem>>, %arg6: memref<1x32xf32, #tpu.memory_space<vmem>>, %arg7: memref<1x32xf32, #tpu.memory_space<vmem>>, %arg8: memref<2x8x32xf32, #tpu.memory_space<vmem>>) attributes {dimension_semantics = [#tpu.dimension_semantics<parallel>], iteration_bounds = array<i64: 1>, scalar_prefetch = 0 : i64, scratch_operands = 0 : i64, tpu.core_type = #tpu.core_type<tc>, window_params = [{transform_indices = @transform_0, window_bounds = array<i64: 2, 8, 32>}, {pipeline_mode = #tpu.pipeline_mode<synchronous>, transform_indices = @transform_1, window_bounds = array<i64: 4, 32, 24>}, {pipeline_mode = #tpu.pipeline_mode<synchronous>, transform_indices = @transform_2, window_bounds = array<i64: 4, 1, 24>}, {pipeline_mode = #tpu.pipeline_mode<synchronous>, transform_indices = @transform_3, window_bounds = array<i64: 4, 8, 32>}, {pipeline_mode = #tpu.pipeline_mode<synchronous>, transform_indices = @transform_4, window_bounds = array<i64: 1, 32>}, {pipeline_mode = #tpu.pipeline_mode<synchronous>, transform_indices = @transform_5, window_bounds = array<i64: 1, 32>}, {pipeline_mode = #tpu.pipeline_mode<synchronous>, transform_indices = @transform_6, window_bounds = array<i64: 1, 32>}, {transform_indices = @transform_7, window_bounds = array<i64: 2, 8, 32>}]} {
    %c0 = arith.constant 0 : index
    %c0_0 = arith.constant 0 : index
    %c0_1 = arith.constant 0 : index
    %0 = vector.load %arg2[%c0, %c0_0, %c0_1] : memref<4x32x24xbf16, #tpu.memory_space<vmem>>, vector<4x32x24xbf16>
    %c0_2 = arith.constant 0 : index
    %c0_3 = arith.constant 0 : index
    %c0_4 = arith.constant 0 : index
    %1 = vector.load %arg3[%c0_2, %c0_3, %c0_4] : memref<4x1x24xf32, #tpu.memory_space<vmem>>, vector<4x1x24xf32>
    %c0_5 = arith.constant 0 : index
    %c0_6 = arith.constant 0 : index
    %c0_7 = arith.constant 0 : index
    %2 = vector.load %arg4[%c0_5, %c0_6, %c0_7] : memref<4x8x32xbf16, #tpu.memory_space<vmem>>, vector<4x8x32xbf16>
    %c0_8 = arith.constant 0 : index
    %c0_9 = arith.constant 0 : index
    %3 = vector.load %arg5[%c0_8, %c0_9] : memref<1x32xf32, #tpu.memory_space<vmem>>, vector<1x32xf32>
    %c0_10 = arith.constant 0 : index
    %c0_11 = arith.constant 0 : index
    %4 = vector.load %arg6[%c0_10, %c0_11] : memref<1x32xf32, #tpu.memory_space<vmem>>, vector<1x32xf32>
    %c0_12 = arith.constant 0 : index
    %c0_13 = arith.constant 0 : index
    %5 = vector.load %arg7[%c0_12, %c0_13] : memref<1x32xf32, #tpu.memory_space<vmem>>, vector<1x32xf32>
    %c0_14 = arith.constant 0 : index
    %c0_15 = arith.constant 0 : index
    %c0_16 = arith.constant 0 : index
    %6 = vector.load %arg1[%c0_14, %c0_15, %c0_16] : memref<2x8x32xf32, #tpu.memory_space<vmem>>, vector<1x8x32xf32>
    %7 = vector.shape_cast %6 : vector<1x8x32xf32> to vector<8x32xf32>
    %8 = arith.truncf %7 : vector<8x32xf32> to vector<8x32xbf16>
    %9 = vector.shape_cast %8 : vector<8x32xbf16> to vector<1x8x32xbf16>
    %10 = vector.broadcast %9 : vector<1x8x32xbf16> to vector<4x8x32xbf16>
    "tpu.trace_start"() <{level = 10 : i32, message = "hse,hef->hsf"}> : () -> ()
    %cst = arith.constant dense<0.000000e+00> : vector<4x8x24xf32>
    %11 = tpu.matmul %10, %0, %cst {dimension_numbers = #tpu.dot_dimension_numbers<[2], [1], [1], [2], [0, 0, 0, 1, 1, 2], [0], [0]>} : vector<4x8x32xbf16>, vector<4x32x24xbf16>, vector<4x8x24xf32> -> vector<4x8x24xf32>
    "tpu.trace_stop"() : () -> ()
    %12 = vector.broadcast %1 : vector<4x1x24xf32> to vector<4x8x24xf32>
    %13 = arith.addf %11, %12 : vector<4x8x24xf32>
    %14 = vector.extract_strided_slice %13 {offsets = [0, 0, 0], sizes = [4, 8, 8], strides = [1, 1, 1]} : vector<4x8x24xf32> to vector<4x8x8xf32>
    %15 = arith.truncf %14 : vector<4x8x8xf32> to vector<4x8x8xbf16>
    %16 = vector.extract_strided_slice %13 {offsets = [0, 0, 8], sizes = [4, 8, 8], strides = [1, 1, 1]} : vector<4x8x24xf32> to vector<4x8x8xf32>
    %17 = arith.truncf %16 : vector<4x8x8xf32> to vector<4x8x8xbf16>
    %18 = vector.extract_strided_slice %13 {offsets = [0, 0, 16], sizes = [4, 8, 8], strides = [1, 1, 1]} : vector<4x8x24xf32> to vector<4x8x8xf32>
    %19 = arith.truncf %18 : vector<4x8x8xf32> to vector<4x8x8xbf16>
    "tpu.trace_start"() <{level = 10 : i32, message = "hqd,hkd->hqk"}> : () -> ()
    %cst_17 = arith.constant dense<0.000000e+00> : vector<4x8x8xf32>
    %20 = tpu.matmul %15, %17, %cst_17 {dimension_numbers = #tpu.dot_dimension_numbers<[2], [2], [1], [1], [0, 0, 0, 1, 1, 1], [0], [0]>} : vector<4x8x8xbf16>, vector<4x8x8xbf16>, vector<4x8x8xf32> -> vector<4x8x8xf32>
    "tpu.trace_stop"() : () -> ()
    %cst_18 = arith.constant dense<0xFF800000> : vector<4x8xf32>
    %21 = vector.multi_reduction <maximumf>, %20, %cst_18 [2] : vector<4x8x8xf32> to vector<4x8xf32>
    %22 = vector.shape_cast %21 : vector<4x8xf32> to vector<4x8x1xf32>
    %23 = vector.broadcast %22 : vector<4x8x1xf32> to vector<4x8x8xf32>
    %24 = arith.subf %20, %23 : vector<4x8x8xf32>
    %25 = math.exp %24 : vector<4x8x8xf32>
    %cst_19 = arith.constant dense<0.000000e+00> : vector<4x8xf32>
    %26 = vector.multi_reduction <add>, %25, %cst_19 [2] : vector<4x8x8xf32> to vector<4x8xf32>
    %27 = vector.shape_cast %26 : vector<4x8xf32> to vector<4x8x1xf32>
    %28 = arith.truncf %25 : vector<4x8x8xf32> to vector<4x8x8xbf16>
    "tpu.trace_start"() <{level = 10 : i32, message = "hqk,hkd->hqd"}> : () -> ()
    %cst_20 = arith.constant dense<0.000000e+00> : vector<4x8x8xf32>
    %29 = tpu.matmul %28, %19, %cst_20 {dimension_numbers = #tpu.dot_dimension_numbers<[2], [1], [1], [2], [0, 0, 0, 1, 1, 2], [0], [0]>} : vector<4x8x8xbf16>, vector<4x8x8xbf16>, vector<4x8x8xf32> -> vector<4x8x8xf32>
    "tpu.trace_stop"() : () -> ()
    %30 = tpu.reciprocal %27 {approx = true} : vector<4x8x1xf32> -> vector<4x8x1xf32>
    %31 = vector.broadcast %30 : vector<4x8x1xf32> to vector<4x8x8xf32>
    %32 = arith.mulf %29, %31 : vector<4x8x8xf32>
    %33 = arith.truncf %32 : vector<4x8x8xf32> to vector<4x8x8xbf16>
    "tpu.trace_start"() <{level = 10 : i32, message = "hsd,hde->hse"}> : () -> ()
    %cst_21 = arith.constant dense<0.000000e+00> : vector<4x8x32xf32>
    %34 = tpu.matmul %33, %2, %cst_21 {dimension_numbers = #tpu.dot_dimension_numbers<[2], [1], [1], [2], [0, 0, 0, 1, 1, 2], [0], [0]>} : vector<4x8x8xbf16>, vector<4x8x32xbf16>, vector<4x8x32xf32> -> vector<4x8x32xf32>
    "tpu.trace_stop"() : () -> ()
    %cst_22 = arith.constant dense<0.000000e+00> : vector<8x32xf32>
    %35 = vector.multi_reduction <add>, %34, %cst_22 [0] : vector<4x8x32xf32> to vector<8x32xf32>
    %36 = vector.broadcast %3 : vector<1x32xf32> to vector<8x32xf32>
    %37 = arith.addf %35, %36 : vector<8x32xf32>
    %38 = arith.addf %7, %37 : vector<8x32xf32>
    %cst_23 = arith.constant dense<0.000000e+00> : vector<8xf32>
    %39 = vector.multi_reduction <add>, %38, %cst_23 [1] : vector<8x32xf32> to vector<8xf32>
    %40 = vector.shape_cast %39 : vector<8xf32> to vector<8x1xf32>
    %cst_24 = arith.constant 3.200000e+01 : f32
    %41 = vector.broadcast %cst_24 : f32 to vector<8x1xf32>
    %42 = arith.divf %40, %41 : vector<8x1xf32>
    %43 = vector.broadcast %42 : vector<8x1xf32> to vector<8x32xf32>
    %44 = arith.subf %38, %43 : vector<8x32xf32>
    %45 = arith.mulf %44, %44 : vector<8x32xf32>
    %cst_25 = arith.constant dense<0.000000e+00> : vector<8xf32>
    %46 = vector.multi_reduction <add>, %45, %cst_25 [1] : vector<8x32xf32> to vector<8xf32>
    %47 = vector.shape_cast %46 : vector<8xf32> to vector<8x1xf32>
    %cst_26 = arith.constant 3.200000e+01 : f32
    %48 = vector.broadcast %cst_26 : f32 to vector<8x1xf32>
    %49 = arith.divf %47, %48 : vector<8x1xf32>
    %cst_27 = arith.constant 9.99999974E-6 : f32
    %50 = vector.broadcast %cst_27 : f32 to vector<8x1xf32>
    %51 = arith.addf %49, %50 : vector<8x1xf32>
    %52 = math.rsqrt %51 : vector<8x1xf32>
    %53 = vector.broadcast %52 : vector<8x1xf32> to vector<8x32xf32>
    %54 = arith.mulf %44, %53 : vector<8x32xf32>
    %55 = vector.broadcast %4 : vector<1x32xf32> to vector<8x32xf32>
    %56 = arith.mulf %54, %55 : vector<8x32xf32>
    %57 = vector.broadcast %5 : vector<1x32xf32> to vector<8x32xf32>
    %58 = arith.addf %56, %57 : vector<8x32xf32>
    %c0_28 = arith.constant 0 : index
    %c0_29 = arith.constant 0 : index
    %c0_30 = arith.constant 0 : index
    %59 = vector.load %arg8[%c0_28, %c0_29, %c0_30] : memref<2x8x32xf32, #tpu.memory_space<vmem>>, vector<1x8x32xf32>
    %60 = vector.shape_cast %59 : vector<1x8x32xf32> to vector<8x32xf32>
    %61 = vector.shape_cast %58 : vector<8x32xf32> to vector<1x8x32xf32>
    tpu.vector_store %arg8[%c0_28, %c0_29, %c0_30], %61 {strides = array<i32>} : memref<2x8x32xf32, #tpu.memory_space<vmem>>, vector<1x8x32xf32>,
    %c1 = arith.constant 1 : index
    %c0_31 = arith.constant 0 : index
    %c0_32 = arith.constant 0 : index
    %62 = vector.load %arg1[%c1, %c0_31, %c0_32] : memref<2x8x32xf32, #tpu.memory_space<vmem>>, vector<1x8x32xf32>
    %63 = vector.shape_cast %62 : vector<1x8x32xf32> to vector<8x32xf32>
    %64 = arith.truncf %63 : vector<8x32xf32> to vector<8x32xbf16>
    %65 = vector.shape_cast %64 : vector<8x32xbf16> to vector<1x8x32xbf16>
    %66 = vector.broadcast %65 : vector<1x8x32xbf16> to vector<4x8x32xbf16>
    "tpu.trace_start"() <{level = 10 : i32, message = "hse,hef->hsf"}> : () -> ()
    %cst_33 = arith.constant dense<0.000000e+00> : vector<4x8x24xf32>
    %67 = tpu.matmul %66, %0, %cst_33 {dimension_numbers = #tpu.dot_dimension_numbers<[2], [1], [1], [2], [0, 0, 0, 1, 1, 2], [0], [0]>} : vector<4x8x32xbf16>, vector<4x32x24xbf16>, vector<4x8x24xf32> -> vector<4x8x24xf32>
    "tpu.trace_stop"() : () -> ()
    %68 = vector.broadcast %1 : vector<4x1x24xf32> to vector<4x8x24xf32>
    %69 = arith.addf %67, %68 : vector<4x8x24xf32>
    %70 = vector.extract_strided_slice %69 {offsets = [0, 0, 0], sizes = [4, 8, 8], strides = [1, 1, 1]} : vector<4x8x24xf32> to vector<4x8x8xf32>
    %71 = arith.truncf %70 : vector<4x8x8xf32> to vector<4x8x8xbf16>
    %72 = vector.extract_strided_slice %69 {offsets = [0, 0, 8], sizes = [4, 8, 8], strides = [1, 1, 1]} : vector<4x8x24xf32> to vector<4x8x8xf32>
    %73 = arith.truncf %72 : vector<4x8x8xf32> to vector<4x8x8xbf16>
    %74 = vector.extract_strided_slice %69 {offsets = [0, 0, 16], sizes = [4, 8, 8], strides = [1, 1, 1]} : vector<4x8x24xf32> to vector<4x8x8xf32>
    %75 = arith.truncf %74 : vector<4x8x8xf32> to vector<4x8x8xbf16>
    "tpu.trace_start"() <{level = 10 : i32, message = "hqd,hkd->hqk"}> : () -> ()
    %cst_34 = arith.constant dense<0.000000e+00> : vector<4x8x8xf32>
    %76 = tpu.matmul %71, %73, %cst_34 {dimension_numbers = #tpu.dot_dimension_numbers<[2], [2], [1], [1], [0, 0, 0, 1, 1, 1], [0], [0]>} : vector<4x8x8xbf16>, vector<4x8x8xbf16>, vector<4x8x8xf32> -> vector<4x8x8xf32>
    "tpu.trace_stop"() : () -> ()
    %cst_35 = arith.constant dense<0xFF800000> : vector<4x8xf32>
    %77 = vector.multi_reduction <maximumf>, %76, %cst_35 [2] : vector<4x8x8xf32> to vector<4x8xf32>
    %78 = vector.shape_cast %77 : vector<4x8xf32> to vector<4x8x1xf32>
    %79 = vector.broadcast %78 : vector<4x8x1xf32> to vector<4x8x8xf32>
    %80 = arith.subf %76, %79 : vector<4x8x8xf32>
    %81 = math.exp %80 : vector<4x8x8xf32>
    %cst_36 = arith.constant dense<0.000000e+00> : vector<4x8xf32>
    %82 = vector.multi_reduction <add>, %81, %cst_36 [2] : vector<4x8x8xf32> to vector<4x8xf32>
    %83 = vector.shape_cast %82 : vector<4x8xf32> to vector<4x8x1xf32>
    %84 = arith.truncf %81 : vector<4x8x8xf32> to vector<4x8x8xbf16>
    "tpu.trace_start"() <{level = 10 : i32, message = "hqk,hkd->hqd"}> : () -> ()
    %cst_37 = arith.constant dense<0.000000e+00> : vector<4x8x8xf32>
    %85 = tpu.matmul %84, %75, %cst_37 {dimension_numbers = #tpu.dot_dimension_numbers<[2], [1], [1], [2], [0, 0, 0, 1, 1, 2], [0], [0]>} : vector<4x8x8xbf16>, vector<4x8x8xbf16>, vector<4x8x8xf32> -> vector<4x8x8xf32>
    "tpu.trace_stop"() : () -> ()
    %86 = tpu.reciprocal %83 {approx = true} : vector<4x8x1xf32> -> vector<4x8x1xf32>
    %87 = vector.broadcast %86 : vector<4x8x1xf32> to vector<4x8x8xf32>
    %88 = arith.mulf %85, %87 : vector<4x8x8xf32>
    %89 = arith.truncf %88 : vector<4x8x8xf32> to vector<4x8x8xbf16>
    "tpu.trace_start"() <{level = 10 : i32, message = "hsd,hde->hse"}> : () -> ()
    %cst_38 = arith.constant dense<0.000000e+00> : vector<4x8x32xf32>
    %90 = tpu.matmul %89, %2, %cst_38 {dimension_numbers = #tpu.dot_dimension_numbers<[2], [1], [1], [2], [0, 0, 0, 1, 1, 2], [0], [0]>} : vector<4x8x8xbf16>, vector<4x8x32xbf16>, vector<4x8x32xf32> -> vector<4x8x32xf32>
    "tpu.trace_stop"() : () -> ()
    %cst_39 = arith.constant dense<0.000000e+00> : vector<8x32xf32>
    %91 = vector.multi_reduction <add>, %90, %cst_39 [0] : vector<4x8x32xf32> to vector<8x32xf32>
    %92 = vector.broadcast %3 : vector<1x32xf32> to vector<8x32xf32>
    %93 = arith.addf %91, %92 : vector<8x32xf32>
    %94 = arith.addf %63, %93 : vector<8x32xf32>
    %cst_40 = arith.constant dense<0.000000e+00> : vector<8xf32>
    %95 = vector.multi_reduction <add>, %94, %cst_40 [1] : vector<8x32xf32> to vector<8xf32>
    %96 = vector.shape_cast %95 : vector<8xf32> to vector<8x1xf32>
    %cst_41 = arith.constant 3.200000e+01 : f32
    %97 = vector.broadcast %cst_41 : f32 to vector<8x1xf32>
    %98 = arith.divf %96, %97 : vector<8x1xf32>
    %99 = vector.broadcast %98 : vector<8x1xf32> to vector<8x32xf32>
    %100 = arith.subf %94, %99 : vector<8x32xf32>
    %101 = arith.mulf %100, %100 : vector<8x32xf32>
    %cst_42 = arith.constant dense<0.000000e+00> : vector<8xf32>
    %102 = vector.multi_reduction <add>, %101, %cst_42 [1] : vector<8x32xf32> to vector<8xf32>
    %103 = vector.shape_cast %102 : vector<8xf32> to vector<8x1xf32>
    %cst_43 = arith.constant 3.200000e+01 : f32
    %104 = vector.broadcast %cst_43 : f32 to vector<8x1xf32>
    %105 = arith.divf %103, %104 : vector<8x1xf32>
    %cst_44 = arith.constant 9.99999974E-6 : f32
    %106 = vector.broadcast %cst_44 : f32 to vector<8x1xf32>
    %107 = arith.addf %105, %106 : vector<8x1xf32>
    %108 = math.rsqrt %107 : vector<8x1xf32>
    %109 = vector.broadcast %108 : vector<8x1xf32> to vector<8x32xf32>
    %110 = arith.mulf %100, %109 : vector<8x32xf32>
    %111 = vector.broadcast %4 : vector<1x32xf32> to vector<8x32xf32>
    %112 = arith.mulf %110, %111 : vector<8x32xf32>
    %113 = vector.broadcast %5 : vector<1x32xf32> to vector<8x32xf32>
    %114 = arith.addf %112, %113 : vector<8x32xf32>
    %c1_45 = arith.constant 1 : index
    %c0_46 = arith.constant 0 : index
    %c0_47 = arith.constant 0 : index
    %115 = vector.load %arg8[%c1_45, %c0_46, %c0_47] : memref<2x8x32xf32, #tpu.memory_space<vmem>>, vector<1x8x32xf32>
    %116 = vector.shape_cast %115 : vector<1x8x32xf32> to vector<8x32xf32>
    %117 = vector.shape_cast %114 : vector<8x32xf32> to vector<1x8x32xf32>
    tpu.vector_store %arg8[%c1_45, %c0_46, %c0_47], %117 {strides = array<i32>} : memref<2x8x32xf32, #tpu.memory_space<vmem>>, vector<1x8x32xf32>,
    return
  }
  func.func @transform_0(%arg0: i32) -> (i32, i32, i32) {
    %c0_i32 = arith.constant 0 : i32
    %c0_i32_0 = arith.constant 0 : i32
    %c0_i32_1 = arith.constant 0 : i32
    return %arg0, %c0_i32, %c0_i32_0 : i32, i32, i32
  }
  func.func @transform_1(%arg0: i32) -> (i32, i32, i32) {
    %c0_i32 = arith.constant 0 : i32
    %c0_i32_0 = arith.constant 0 : i32
    %c0_i32_1 = arith.constant 0 : i32
    %c0_i32_2 = arith.constant 0 : i32
    return %c0_i32, %c0_i32_0, %c0_i32_1 : i32, i32, i32
  }
  func.func @transform_2(%arg0: i32) -> (i32, i32, i32) {
    %c0_i32 = arith.constant 0 : i32
    %c0_i32_0 = arith.constant 0 : i32
    %c0_i32_1 = arith.constant 0 : i32
    %c0_i32_2 = arith.constant 0 : i32
    return %c0_i32, %c0_i32_0, %c0_i32_1 : i32, i32, i32
  }
  func.func @transform_3(%arg0: i32) -> (i32, i32, i32) {
    %c0_i32 = arith.constant 0 : i32
    %c0_i32_0 = arith.constant 0 : i32
    %c0_i32_1 = arith.constant 0 : i32
    %c0_i32_2 = arith.constant 0 : i32
    return %c0_i32, %c0_i32_0, %c0_i32_1 : i32, i32, i32
  }
  func.func @transform_4(%arg0: i32) -> (i32, i32) {
    %c0_i32 = arith.constant 0 : i32
    %c0_i32_0 = arith.constant 0 : i32
    %c0_i32_1 = arith.constant 0 : i32
    return %c0_i32, %c0_i32_0 : i32, i32
  }
  func.func @transform_5(%arg0: i32) -> (i32, i32) {
    %c0_i32 = arith.constant 0 : i32
    %c0_i32_0 = arith.constant 0 : i32
    %c0_i32_1 = arith.constant 0 : i32
    return %c0_i32, %c0_i32_0 : i32, i32
  }
  func.func @transform_6(%arg0: i32) -> (i32, i32) {
    %c0_i32 = arith.constant 0 : i32
    %c0_i32_0 = arith.constant 0 : i32
    %c0_i32_1 = arith.constant 0 : i32
    return %c0_i32, %c0_i32_0 : i32, i32
  }
  func.func @transform_7(%arg0: i32) -> (i32, i32, i32) {
    %c0_i32 = arith.constant 0 : i32
    %c0_i32_0 = arith.constant 0 : i32
    %c0_i32_1 = arith.constant 0 : i32
    return %arg0, %c0_i32, %c0_i32_0 : i32, i32, i32
  }
}

</mosaic_0001>

<bundles_post_ra>
// kernel: tpu_custom_call.1
= control target key start
LH: loop header
LB: loop body
LE: loop exit
PB: predicated region body
PF: predicated region fallthrough
CT: control target
= control target key end

     0   :  { %s1395_s0 = inlined_call_operand.vmem [shape: f32[2,8,32], index: 0, kind: input, shape index: {}]   ;;  %s1396_s1 = inlined_call_operand.vmem [shape: bf16[4,32,24], index: 1, kind: input, shape index: {}]   ;;  %s1397_s2 = inlined_call_operand.vmem [shape: f32[4,1,24], index: 2, kind: input, shape index: {}]   ;;  %s1398_s3 = inlined_call_operand.vmem [shape: bf16[4,8,32], index: 3, kind: input, shape index: {}]   ;;  %s1399_s4 = inlined_call_operand.vmem [shape: f32[1,32], index: 4, kind: input, shape index: {}]   ;;  %s1400_s5 = inlined_call_operand.vmem [shape: f32[1,32], index: 5, kind: input, shape index: {}]   ;;  %s1401_s6 = inlined_call_operand.vmem [shape: f32[1,32], index: 6, kind: input, shape index: {}]   ;;  %s1402_s7 = inlined_call_operand.hbm [shape: f32[2,8,32], index: 7, kind: output, shape index: {}]  }
   0x1   :  { %v1147_v0 = vld [vmem:[%s1396_s1 + $0x8] sm:$0xff]  ;;  %v1157_v2 = vld [vmem:[%s1396_s1 + $0x38] sm:$0xff]  ;;  %v1162_v3 = vld [vmem:[%s1396_s1] sm:$0xff] }
   0x2   :  { %v1152_v1 = vld [vmem:[%s1396_s1 + $0x28] sm:$0xff]  ;;  %v1167_v4 = vld [vmem:[%s1396_s1 + $0x20] sm:$0xff]  ;;  %91 = vmatpush.bf16.msra.mxu0 %v1147_v0  ;;  %v1174_v5 = vld [vmem:[%s1396_s1 + $0x30] sm:$0xff]  ;;  %166 = vmatpush.bf16.msra.mxu3 %v1157_v2 }
   0x3   :  { %141 = vmatpush.bf16.msra.mxu2 %v1152_v1  ;;  %v1179_v6 = vld [vmem:[%s1395_s0] sm:$0xff]  ;;  %v1184_v7 = vld [vmem:[%s1396_s1 + $0x18] sm:$0xff]  ;;  %v1190_v8 = vld [vmem:[%s1396_s1 + $0x10] sm:$0xff] }
   0x4   :  { %116 = vmatpush.bf16.msra.mxu1 %v1184_v7  ;;  %v56_v9 = vpack.c.bf16 %v1179_v6, %v1179_v6 }
   0x5   :  { %12 = vsyncpa [#allocation3], 0  ;;  %vm81_vm0 = vcmask 261120   ;;  %v1206_v10 = vld [vmem:[%s1397_s2] ss:$0 sm:$0xff]  ;;  %s1098_s26 = smov 120  }
   0x6   :  { %92 = vmatpush.bf16.msra.mxu0 %v1162_v3  ;;  %167 = vmatpush.bf16.msra.mxu3 %v1174_v5  ;;  %v1211_v11 = vld [vmem:[%s1397_s2 + $0x1] ss:$0 sm:$0xff]  ;;  %v1217_v16 = vld [vmem:[%s1397_s2 + $0x2] ss:$0 sm:$0xff]  ;;  %v1223_v18 = vld [vmem:[%s1397_s2 + $0x3] ss:$0 sm:$0xff] }
   0x7   :  { %142 = vmatpush.bf16.msra.mxu2 %v1167_v4  ;;  %s1099_s2 = smov 112   ;;  %vm182_vm1 = vcmask 64512   ;;  %vm319_vm2 = vcmask 1043456   ;;  %s936_s1 = sshll.u32 %s1402_s7, 4  ;;  %s937_s1 = int_to_ptr.hbm [resolvable:$true] %s936_s1 }
   0x8   :  { %117 = vmatpush.bf16.msra.mxu1 %v1190_v8  ;;  %s1102_s19 = smov 128   ;;  %s1103_s20 = smov 8  }
   0x9   :  { %956 = vmatmul.msk.bf16.vlgmr.msra.gmra.mxu0 %vm81_vm0, %v56_v9  ;;  %983 = vmatmul.msk.bf16.vlgmr.msra.gmra.mxu3 %vm81_vm0, %v56_v9 }
   0xa   :  { %974 = vmatmul.msk.bf16.vlgmr.msra.gmra.mxu2 %vm81_vm0, %v56_v9 }
   0xb   :  { %965 = vmatmul.msk.bf16.vlgmr.msra.gmra.mxu1 %vm81_vm0, %v56_v9 }
  0x86   :  { %v94_v12 = vpop.f32.mrf.mxu0 }
  0x87   :  { %v95_v13 = vadd.f32 %v1206_v10, %v94_v12 }
  0x88   :  { %v119_v14 = vpop.f32.mrf.mxu1 }
  0x89   :  { %v173_v15 = vpack.c.bf16 %v95_v13, %v95_v13  ;;  %v120_v17 = vadd.f32 %v1211_v11, %v119_v14 }
  0x8b   :  { %v174_v19 = vpack.c.bf16 %v120_v17, %v120_v17  ;;  %v178_v20 = vunpack.c.l.b16 %v173_v15 }
  0x8c   :  { %v169_v23 = vpop.f32.mrf.mxu3 }
  0x8d   :  { %v144_v21 = vpop.f32.mrf.mxu2  ;;  %v179_v24 = vpack.c.b16 %v178_v20, %v178_v20  ;;  %v170_v25 = vadd.f32 %v1223_v18, %v169_v23  ;;  %v203_v28 = vunpack.c.l.b16 %v174_v19 }
  0x8e   :  { %v145_v22 = vadd.f32 %v1217_v16, %v144_v21  ;;  %v96_v26 = vpop.f32.mrf.mxu0 }
  0x8f   :  { %180 = vrot.lane.b32.xlu1 %v179_v24, %s1098_s26  ;;  %v176_v30 = vpack.c.bf16 %v170_v25, %v170_v25  ;;  %v204_v32 = vpack.c.b16 %v203_v28, %v203_v28 }
  0x90   :  { %v175_v27 = vpack.c.bf16 %v145_v22, %v145_v22  ;;  %v121_v29 = vpop.f32.mrf.mxu1 }
  0x91   :  { %v251_v35 = vunpack.c.l.b16 %v176_v30 }
  0x92   :  { %v227_v31 = vunpack.c.l.b16 %v175_v27 }
  0x93   :  { %v252_v37 = vpack.c.b16 %v251_v35, %v251_v35 }
  0x94   :  { %v228_v33 = vpack.c.b16 %v227_v31, %v227_v31  ;;  %v171_v36 = vpop.f32.mrf.mxu3 }
  0x95   :  { %v146_v34 = vpop.f32.mrf.mxu2 }
  0x96   :  { %229 = vrot.lane.b32.xlu0 %v228_v33, %s1098_s26 }
  0x97   :  { %205 = vrot.lane.b32.xlu1 %v204_v32, %s1098_s26 }
  0x9e   :  { %253 = vrot.lane.b32.xlu0 %v252_v37, %s1098_s26 }
  0x9f   :  { %378 = vrot.lane.b32.xlu1 %v252_v37, %s1099_s2 }
  0xa6   :  { %357 = vrot.lane.b32.xlu0 %v228_v33, %s1099_s2 }
  0xa7   :  { %314 = vrot.lane.b32.xlu1 %v179_v24, %s1099_s2 }
 0x101   :  { %v181_v38 = vpop.permute.xlu1 %180 }
 0x102   :  { %v187_v39 = vsel %vm182_vm1, %v181_v38, 0 }
 0x103   :  { %196 = vmatpush.bf16.xpose.msrb.mxu0 %v187_v39  ;;  %v48_v39 = vld [vmem:[%s1398_s3] sm:$0xf] }
 0x108   :  { %v230_v40 = vpop.permute.xlu0 %229 }
 0x109   :  { %v235_v41 = vsel %vm182_vm1, %v230_v40, 0  ;;  %v206_v42 = vpop.permute.xlu1 %205  ;;  %v1263_v40 = vsel %vm319_vm2, %v48_v39, 0 }
 0x10a   :  { %244 = vmatpush.bf16.xpose.msrb.mxu2 %v235_v41  ;;  %984 = vmatmul.msk.bf16.vlgmr.msrb.gmra.mxu0 %vm182_vm1, %v173_v15  ;;  %v211_v43 = vsel %vm182_vm1, %v206_v42, 0  ;;  %v50_v41 = vld [vmem:[%s1398_s3 + $0x8] sm:$0xf] }
 0x10b   :  { %220 = vmatpush.bf16.xpose.msrb.mxu1 %v211_v43  ;;  %v1272_v42 = vsel %vm319_vm2, %v50_v41, 0  ;;  %v49_v43 = vld [vmem:[%s1398_s3 + $0x4] sm:$0xf] }
 0x110   :  { %v254_v44 = vpop.permute.xlu0 %253 }
 0x111   :  { %986 = vmatmul.msk.bf16.vlgmr.msrb.gmra.mxu2 %vm182_vm1, %v175_v27  ;;  %v259_v45 = vsel %vm182_vm1, %v254_v44, 0  ;;  %v379_v46 = vpop.permute.xlu1 %378  ;;  %v1279_v44 = vsel %vm319_vm2, %v49_v43, 0 }
 0x112   :  { %268 = vmatpush.bf16.xpose.msrb.mxu3 %v259_v45  ;;  %v384_v47 = vsel %vm319_vm2, %v379_v46, 0  ;;  %985 = vmatmul.msk.bf16.vlgmr.msrb.gmra.mxu1 %vm182_vm1, %v174_v19 }
 0x118   :  { %v358_v48 = vpop.permute.xlu0 %357 }
 0x119   :  { %v363_v49 = vsel %vm319_vm2, %v358_v48, 0  ;;  %987 = vmatmul.msk.bf16.vlgmr.msrb.gmra.mxu3 %vm182_vm1, %v176_v30  ;;  %v315_v50 = vpop.permute.xlu1 %314 }
 0x11a   :  { %393 = vmatpush.bf16.msra.mxu3 %v384_v47  ;;  %372 = vmatpush.bf16.msra.mxu2 %v363_v49  ;;  %v321_v51 = vsel %vm319_vm2, %v315_v50, 0 }
 0x11b   :  { %330 = vmatpush.bf16.msra.mxu0 %v321_v51 }
 0x11e   :  { %462 = vmatpush.bf16.msrb.mxu2 %v1272_v42 }
 0x11f   :  { %424 = vmatpush.bf16.msrb.mxu0 %v1263_v40 }
 0x187   :  { %v198_v52 = vpop.f32.mrf.mxu0 }
 0x188   :  { %v274_v53 = vsel %vm182_vm1, %v198_v52, -inf }
 0x189   :  { %275 = vmax.xlane.f32.xlu2 %v274_v53 }
 0x18f   :  { %v200_v54 = vpop.f32.mrf.mxu0  ;;  %v222_v55 = vpop.f32.mrf.mxu1 }
 0x190   :  { %v277_v56 = vsel %vm182_vm1, %v222_v55, -inf }
 0x191   :  { %278 = vmax.xlane.f32.xlu0 %v277_v56 }
 0x194   :  { %v246_v57 = vpop.f32.mrf.mxu2 }
 0x195   :  { %v280_v58 = vsel %vm182_vm1, %v246_v57, -inf }
 0x196   :  { %281 = vmax.xlane.f32.xlu2 %v280_v58 }
 0x197   :  { %v224_v59 = vpop.f32.mrf.mxu1 }
 0x19c   :  { %v248_v60 = vpop.f32.mrf.mxu2  ;;  %v270_v61 = vpop.f32.mrf.mxu3 }
 0x19d   :  { %v283_v62 = vsel %vm182_vm1, %v270_v61, -inf }
 0x19e   :  { %284 = vmax.xlane.f32.xlu2 %v283_v62 }
 0x1a4   :  { %v272_v63 = vpop.f32.mrf.mxu3 }
 0x1b6   :  { %336 = vrot.lane.b32.xlu2 %v204_v32, %s1099_s2 }
 0x1fc   :  { %v276_v9 = vpop.xlane.xlu2 %275 }
 0x1fd   :  { %v286_v12 = vsub.f32 %v198_v52, %v276_v9 }
 0x1ff   :  { %v290_v13 = vmul.f32 1.442695, %v286_v12 }
 0x201   :  { %1034 = vpow2.f32 %v290_v13 }
 0x204   :  { %v279_v14 = vpop.xlane.xlu0 %278 }
 0x205   :  { %v287_v15 = vsub.f32 %v222_v55, %v279_v14 }
 0x207   :  { %v1035_v17 = vpop.eup %1034  ;;  %v292_v19 = vmul.f32 1.442695, %v287_v15 }
 0x208   :  { %v310_v20 = vpack.c.bf16 %v1035_v17, %v1035_v17  ;;  %v298_v22 = vsel %vm182_vm1, %v1035_v17, 0.0 }
 0x209   :  { %v282_v21 = vpop.xlane.xlu2 %281  ;;  %1036 = vpow2.f32 %v292_v19  ;;  %299 = vadd.xlane.f32.xlu0 %v298_v22 }
 0x20a   :  { %v288_v23 = vsub.f32 %v246_v57, %v282_v21  ;;  %988 = vmatmul.msk.bf16.vlgmr.msra.gmra.mxu0 %vm182_vm1, %v310_v20 }
 0x20b   :  { %549 = vmatpush.bf16.msra.mxu0 %v1147_v0 }
 0x20c   :  { %v294_v24 = vmul.f32 1.442695, %v288_v23 }
 0x20e   :  { %1038 = vpow2.f32 %v294_v24 }
 0x20f   :  { %v1037_v25 = vpop.eup %1036  ;;  %550 = vmatpush.bf16.msra.mxu0 %v1162_v3  ;;  %v51_v3 = vld [vmem:[%s1398_s3 + $0xc] sm:$0xf] }
 0x210   :  { %v301_v27 = vsel %vm182_vm1, %v1037_v25, 0.0  ;;  %v311_v36 = vpack.c.bf16 %v1037_v25, %v1037_v25  ;;  %v1290_v45 = vsel %vm319_vm2, %v51_v3, 0 }
 0x211   :  { %v285_v26 = vpop.xlane.xlu2 %284  ;;  %302 = vadd.xlane.f32.xlu0 %v301_v27  ;;  %481 = vmatpush.bf16.msrb.mxu3 %v1290_v45 }
 0x212   :  { %v289_v28 = vsub.f32 %v270_v61, %v285_v26 }
 0x214   :  { %v1039_v29 = vpop.eup %1038  ;;  %v296_v30 = vmul.f32 1.442695, %v289_v28 }
 0x215   :  { %v312_v31 = vpack.c.bf16 %v1039_v29, %v1039_v29  ;;  %v304_v32 = vsel %vm182_vm1, %v1039_v29, 0.0 }
 0x216   :  { %1040 = vpow2.f32 %v296_v30  ;;  %305 = vadd.xlane.f32.xlu1 %v304_v32 }
 0x217   :  { %990 = vmatmul.msk.bf16.vlgmr.msra.gmra.mxu2 %vm182_vm1, %v312_v31 }
 0x218   :  { %575 = vmatpush.bf16.msra.mxu2 %v1152_v1 }
 0x219   :  { %v337_v33 = vpop.permute.xlu2 %336 }
 0x21a   :  { %v342_v34 = vsel %vm319_vm2, %v337_v33, 0 }
 0x21b   :  { %351 = vmatpush.bf16.msra.mxu1 %v342_v34 }
 0x21c   :  { %v1041_v35 = vpop.eup %1040  ;;  %576 = vmatpush.bf16.msra.mxu2 %v1167_v4 }
 0x21d   :  { %v313_v37 = vpack.c.bf16 %v1041_v35, %v1041_v35  ;;  %v307_v38 = vsel %vm182_vm1, %v1041_v35, 0.0 }
 0x21e   :  { %308 = vadd.xlane.f32.xlu2 %v307_v38  ;;  %989 = vmatmul.msk.bf16.vlgmr.msra.gmra.mxu1 %vm182_vm1, %v311_v36 }
 0x21f   :  { %991 = vmatmul.msk.bf16.vlgmr.msra.gmra.mxu3 %vm182_vm1, %v313_v37  ;;  %443 = vmatpush.bf16.msrb.mxu1 %v1279_v44 }
 0x220   :  { %588 = vmatpush.bf16.msra.mxu3 %v1157_v2 }
 0x223   :  { %562 = vmatpush.bf16.msra.mxu1 %v1184_v7 }
 0x224   :  { %589 = vmatpush.bf16.msra.mxu3 %v1174_v5 }
 0x227   :  { %563 = vmatpush.bf16.msra.mxu1 %v1190_v8  ;;  %v1299_v8 = vld [vmem:[%s1395_s0 + $0x8] sm:$0xff] }
 0x228   :  { %v539_v2 = vpack.c.bf16 %v1299_v8, %v1299_v8 }
 0x27c   :  { %v300_v0 = vpop.xlane.xlu0 %299 }
 0x27d   :  { %1042 = vrcp.f32 %v300_v0 }
 0x283   :  { %v1043_v1 = vpop.eup %1042 }
 0x284   :  { %v303_v49 = vpop.xlane.xlu0 %302 }
 0x287   :  { %v332_v46 = vpop.f32.mrf.mxu0 }
 0x288   :  { %v403_v47 = vmul.f32 %v1043_v1, %v332_v46 }
 0x289   :  { %v306_v48 = vpop.xlane.xlu1 %305 }
 0x28a   :  { %v407_v7 = vpack.c.bf16 %v403_v47, %v403_v47  ;;  %1044 = vrcp.f32 %v306_v48 }
 0x28b   :  { %1046 = vrcp.f32 %v303_v49 }
 0x28c   :  { %992 = vmatmul.msk.bf16.vlgmr.msrb.gmra.mxu0 %vm182_vm1, %v407_v7 }
 0x28f   :  { %v334_v4 = vpop.f32.mrf.mxu0 }
 0x290   :  { %v1045_v51 = vpop.eup %1044 }
 0x291   :  { %v309_v50 = vpop.xlane.xlu2 %308  ;;  %v1047_v5 = vpop.eup %1046 }
 0x292   :  { %1048 = vrcp.f32 %v309_v50 }
 0x298   :  { %v1049_v58 = vpop.eup %1048 }
 0x29a   :  { %v374_v52 = vpop.f32.mrf.mxu2 }
 0x29b   :  { %v405_v53 = vmul.f32 %v1045_v51, %v374_v52  ;;  %v353_v54 = vpop.f32.mrf.mxu1 }
 0x29c   :  { %v404_v55 = vmul.f32 %v1047_v5, %v353_v54  ;;  %997 = vmatmul.msk.bf16.vlgmr.msra.gmra.mxu0 %vm81_vm0, %v539_v2 }
 0x29d   :  { %v409_v56 = vpack.c.bf16 %v405_v53, %v405_v53 }
 0x29e   :  { %v408_v57 = vpack.c.bf16 %v404_v55, %v404_v55 }
 0x29f   :  { %994 = vmatmul.msk.bf16.vlgmr.msrb.gmra.mxu2 %vm182_vm1, %v409_v56 }
 0x2a0   :  { %993 = vmatmul.msk.bf16.vlgmr.msrb.gmra.mxu1 %vm182_vm1, %v408_v57 }
 0x2a2   :  { %v376_v59 = vpop.f32.mrf.mxu2  ;;  %v395_v60 = vpop.f32.mrf.mxu3 }
 0x2a3   :  { %v406_v61 = vmul.f32 %v1049_v58, %v395_v60  ;;  %v355_v62 = vpop.f32.mrf.mxu1 }
 0x2a5   :  { %v410_v63 = vpack.c.bf16 %v406_v61, %v406_v61 }
 0x2a7   :  { %995 = vmatmul.msk.bf16.vlgmr.msrb.gmra.mxu3 %vm182_vm1, %v410_v63 }
 0x2aa   :  { %v397_v9 = vpop.f32.mrf.mxu3 }
 0x2af   :  { %999 = vmatmul.msk.bf16.vlgmr.msra.gmra.mxu2 %vm81_vm0, %v539_v2 }
 0x2b0   :  { %998 = vmatmul.msk.bf16.vlgmr.msra.gmra.mxu1 %vm81_vm0, %v539_v2 }
 0x2b7   :  { %1000 = vmatmul.msk.bf16.vlgmr.msra.gmra.mxu3 %vm81_vm0, %v539_v2 }
 0x309   :  { %v426_v12 = vpop.f32.mrf.mxu0 }
 0x30a   :  { %v487_v20 = vsel %vm81_vm0, %v426_v12, 0.0 }
 0x311   :  { %v428_v13 = vpop.f32.mrf.mxu0 }
 0x319   :  { %v552_v14 = vpop.f32.mrf.mxu0 }
 0x31a   :  { %v553_v15 = vadd.f32 %v1206_v10, %v552_v14 }
 0x31c   :  { %v595_v17 = vpack.c.bf16 %v553_v15, %v553_v15 }
 0x31d   :  { %v445_v19 = vpop.f32.mrf.mxu1 }
 0x31e   :  { %v488_v21 = vsel %vm81_vm0, %v445_v19, 0.0  ;;  %v600_v22 = vunpack.c.l.b16 %v595_v17 }
 0x31f   :  { %v489_v23 = vadd.f32 %v488_v21, %v487_v20 }
 0x320   :  { %v601_v24 = vpack.c.b16 %v600_v22, %v600_v22 }
 0x321   :  { %v554_v26 = vpop.f32.mrf.mxu0 }
 0x322   :  { %v464_v25 = vpop.f32.mrf.mxu2  ;;  %602 = vrot.lane.b32.xlu2 %v601_v24, %s1098_s26 }
 0x323   :  { %v490_v27 = vsel %vm81_vm0, %v464_v25, 0.0 }
 0x324   :  { %v491_v28 = vadd.f32 %v490_v27, %v489_v23 }
 0x325   :  { %v447_v29 = vpop.f32.mrf.mxu1 }
 0x32a   :  { %v466_v30 = vpop.f32.mrf.mxu2  ;;  %v483_v31 = vpop.f32.mrf.mxu3 }
 0x32b   :  { %v492_v10 = vsel %vm81_vm0, %v483_v31, 0.0 }
 0x32c   :  { %v1316_v32 = vadd.f32 %v492_v10, %v491_v28 }
 0x32d   :  { %v565_v33 = vpop.f32.mrf.mxu1 }
 0x32e   :  { %v566_v37 = vadd.f32 %v1211_v11, %v565_v33 }
 0x330   :  { %v596_v43 = vpack.c.bf16 %v566_v37, %v566_v37 }
 0x332   :  { %v485_v34 = vpop.f32.mrf.mxu3  ;;  %v578_v35 = vpop.f32.mrf.mxu2  ;;  %v624_v46 = vunpack.c.l.b16 %v596_v43 }
 0x333   :  { %v579_v36 = vadd.f32 %v1217_v16, %v578_v35 }
 0x334   :  { %v625_v4 = vpack.c.b16 %v624_v46, %v624_v46 }
 0x335   :  { %v597_v38 = vpack.c.bf16 %v579_v36, %v579_v36  ;;  %v567_v39 = vpop.f32.mrf.mxu1 }
 0x337   :  { %v648_v41 = vunpack.c.l.b16 %v597_v38 }
 0x339   :  { %v649_v0 = vpack.c.b16 %v648_v41, %v648_v41 }
 0x33a   :  { %v580_v3 = vpop.f32.mrf.mxu2  ;;  %v591_v1 = vpop.f32.mrf.mxu3 }
 0x33b   :  { %v592_v47 = vadd.f32 %v1223_v18, %v591_v1  ;;  %650 = vrot.lane.b32.xlu1 %v649_v0, %s1098_s26 }
 0x33d   :  { %v598_v7 = vpack.c.bf16 %v592_v47, %v592_v47 }
 0x33f   :  { %v672_v48 = vunpack.c.l.b16 %v598_v7 }
 0x341   :  { %v673_v49 = vpack.c.b16 %v672_v48, %v672_v48 }
 0x342   :  { %v593_v50 = vpop.f32.mrf.mxu3 }
 0x343   :  { %674 = vrot.lane.b32.xlu0 %v673_v49, %s1098_s26  ;;  %626 = vrot.lane.b32.xlu1 %v625_v4, %s1098_s26 }
 0x37c   :  { %v603_v11 = vpop.permute.xlu2 %602 }
 0x37d   :  { %v608_v16 = vsel %vm182_vm1, %v603_v11, 0  ;;  %v1100_v11 = vmov 32.0  }
 0x37e   :  { %617 = vmatpush.bf16.xpose.msrb.mxu0 %v608_v16 }
 0x385   :  { %1001 = vmatmul.msk.bf16.vlgmr.msrb.gmra.mxu0 %vm182_vm1, %v595_v17 }
 0x3ad   :  { %v651_v2 = vpop.permute.xlu1 %650 }
 0x3ae   :  { %v656_v18 = vsel %vm182_vm1, %v651_v2, 0 }
 0x3af   :  { %665 = vmatpush.bf16.xpose.msrb.mxu2 %v656_v18 }
 0x3b5   :  { %v675_v51 = vpop.permute.xlu0 %674  ;;  %v627_v52 = vpop.permute.xlu1 %626 }
 0x3b6   :  { %v680_v5 = vsel %vm182_vm1, %v675_v51, 0  ;;  %v632_v53 = vsel %vm182_vm1, %v627_v52, 0  ;;  %1003 = vmatmul.msk.bf16.vlgmr.msrb.gmra.mxu2 %vm182_vm1, %v597_v38 }
 0x3b7   :  { %641 = vmatpush.bf16.xpose.msrb.mxu1 %v632_v53  ;;  %689 = vmatpush.bf16.xpose.msrb.mxu3 %v680_v5 }
 0x3be   :  { %1002 = vmatmul.msk.bf16.vlgmr.msrb.gmra.mxu1 %vm182_vm1, %v596_v43  ;;  %1004 = vmatmul.msk.bf16.vlgmr.msrb.gmra.mxu3 %vm182_vm1, %v598_v7 }
 0x402   :  { %v619_v54 = vpop.f32.mrf.mxu0 }
 0x403   :  { %v695_v55 = vsel %vm182_vm1, %v619_v54, -inf }
 0x404   :  { %696 = vmax.xlane.f32.xlu2 %v695_v55 }
 0x40a   :  { %v621_v56 = vpop.f32.mrf.mxu0 }
 0x41c   :  { %735 = vrot.lane.b32.xlu2 %v601_v24, %s1099_s2 }
 0x439   :  { %v667_v57 = vpop.f32.mrf.mxu2 }
 0x43a   :  { %v701_v9 = vsel %vm182_vm1, %v667_v57, -inf }
 0x43b   :  { %v643_v58 = vpop.f32.mrf.mxu1 }
 0x43c   :  { %v698_v59 = vsel %vm182_vm1, %v643_v58, -inf }
 0x43d   :  { %699 = vmax.xlane.f32.xlu0 %v698_v59 }
 0x441   :  { %v669_v60 = vpop.f32.mrf.mxu2  ;;  %v691_v61 = vpop.f32.mrf.mxu3 }
 0x442   :  { %v704_v62 = vsel %vm182_vm1, %v691_v61, -inf }
 0x443   :  { %705 = vmax.xlane.f32.xlu1 %v704_v62  ;;  %v645_v63 = vpop.f32.mrf.mxu1 }
 0x445   :  { %702 = vmax.xlane.f32.xlu0 %v701_v9 }
 0x449   :  { %v693_v12 = vpop.f32.mrf.mxu3 }
 0x459   :  { %798 = vrot.lane.b32.xlu0 %v673_v49, %s1099_s2 }
 0x45c   :  { %777 = vrot.lane.b32.xlu1 %v649_v0, %s1099_s2 }
 0x461   :  { %756 = vrot.lane.b32.xlu0 %v625_v4, %s1099_s2 }
 0x477   :  { %v697_v13 = vpop.xlane.xlu2 %696 }
 0x478   :  { %v707_v14 = vsub.f32 %v619_v54, %v697_v13 }
 0x47a   :  { %v711_v15 = vmul.f32 1.442695, %v707_v14 }
 0x47c   :  { %1050 = vpow2.f32 %v711_v15 }
 0x47f   :  { %v736_v17 = vpop.permute.xlu2 %735 }
 0x480   :  { %v741_v19 = vsel %vm319_vm2, %v736_v17, 0 }
 0x481   :  { %750 = vmatpush.bf16.msra.mxu0 %v741_v19 }
 0x482   :  { %v1051_v20 = vpop.eup %1050 }
 0x483   :  { %v731_v21 = vpack.c.bf16 %v1051_v20, %v1051_v20  ;;  %v719_v22 = vsel %vm182_vm1, %v1051_v20, 0.0 }
 0x485   :  { %841 = vmatpush.bf16.msrb.mxu0 %v1263_v40  ;;  %v1347_v40 = vld [vmem:[%s1399_s4] ss:$0 sm:$0xff] }
 0x486   :  { %1005 = vmatmul.msk.bf16.vlgmr.msra.gmra.mxu0 %vm182_vm1, %v731_v21  ;;  %v497_v33 = vadd.f32 %v1347_v40, %v1316_v32 }
 0x488   :  { %v498_v37 = vadd.f32 %v497_v33, %v1179_v6 }
 0x48a   :  { %v499_v39 = vsel %vm81_vm0, %v498_v37, 0.0 }
 0x48b   :  { %720 = vadd.xlane.f32.xlu0 %v719_v22 }
 0x4b0   :  { %v700_v23 = vpop.xlane.xlu0 %699 }
 0x4b1   :  { %v708_v29 = vsub.f32 %v643_v58, %v700_v23 }
 0x4b3   :  { %v713_v31 = vmul.f32 1.442695, %v708_v29 }
 0x4b6   :  { %v706_v24 = vpop.xlane.xlu1 %705 }
 0x4b7   :  { %v710_v25 = vsub.f32 %v691_v61, %v706_v24 }
 0x4b8   :  { %v703_v26 = vpop.xlane.xlu0 %702 }
 0x4b9   :  { %v717_v27 = vmul.f32 1.442695, %v710_v25  ;;  %v709_v28 = vsub.f32 %v667_v57, %v703_v26 }
 0x4bb   :  { %1052 = vpow2.f32 %v717_v27  ;;  %v715_v30 = vmul.f32 1.442695, %v709_v28 }
 0x4bd   :  { %1054 = vpow2.f32 %v715_v30 }
 0x4be   :  { %1056 = vpow2.f32 %v713_v31 }
 0x4c1   :  { %v1053_v10 = vpop.eup %1052 }
 0x4c2   :  { %v728_v34 = vsel %vm182_vm1, %v1053_v10, 0.0  ;;  %v734_v32 = vpack.c.bf16 %v1053_v10, %v1053_v10 }
 0x4c3   :  { %v1055_v35 = vpop.eup %1054  ;;  %729 = vadd.xlane.f32.xlu2 %v728_v34 }
 0x4c4   :  { %v725_v36 = vsel %vm182_vm1, %v1055_v35, 0.0  ;;  %v1057_v38 = vpop.eup %1056  ;;  %v733_v6 = vpack.c.bf16 %v1055_v35, %v1055_v35  ;;  %v1032_v35 = vld [vmem:[%s1400_s5] ss:$0 sm:$0xff]  ;;  %s1101_s5 = smov [#allocation2]  }
 0x4c5   :  { %726 = vadd.xlane.f32.xlu1 %v725_v36  ;;  %v722_v0 = vsel %vm182_vm1, %v1057_v38, 0.0  ;;  %v732_v7 = vpack.c.bf16 %v1057_v38, %v1057_v38  ;;  %v1033_v38 = vld [vmem:[%s1401_s6] ss:$0 sm:$0xff]  ;;  %s934_s6 = sshll.u32 %s1101_s5, 4  ;;  %s935_s6 = int_to_ptr.vmem [resolvable:$true] %s934_s6 }
 0x4cb   :  { %v799_v41 = vpop.permute.xlu0 %798  ;;  %500 = vadd.xlane.f32.xlu2 %v499_v39 }
 0x4cc   :  { %v804_v43 = vsel %vm319_vm2, %v799_v41, 0 }
 0x4cd   :  { %723 = vadd.xlane.f32.xlu1 %v722_v0  ;;  %813 = vmatpush.bf16.msra.mxu3 %v804_v43 }
 0x4ce   :  { %v778_v3 = vpop.permute.xlu1 %777 }
 0x4cf   :  { %v783_v1 = vsel %vm319_vm2, %v778_v3, 0 }
 0x4d0   :  { %792 = vmatpush.bf16.msra.mxu2 %v783_v1  ;;  %1008 = vmatmul.msk.bf16.vlgmr.msra.gmra.mxu3 %vm182_vm1, %v734_v32 }
 0x4d1   :  { %889 = vmatpush.bf16.msrb.mxu3 %v1290_v45 }
 0x4d3   :  { %v757_v46 = vpop.permute.xlu0 %756  ;;  %1007 = vmatmul.msk.bf16.vlgmr.msra.gmra.mxu2 %vm182_vm1, %v733_v6 }
 0x4d4   :  { %873 = vmatpush.bf16.msrb.mxu2 %v1272_v42  ;;  %v762_v47 = vsel %vm319_vm2, %v757_v46, 0 }
 0x4d5   :  { %771 = vmatpush.bf16.msra.mxu1 %v762_v47 }
 0x4d8   :  { %1006 = vmatmul.msk.bf16.vlgmr.msra.gmra.mxu1 %vm182_vm1, %v732_v7 }
 0x4d9   :  { %857 = vmatpush.bf16.msrb.mxu1 %v1279_v44 }
 0x4fe   :  { %v721_v45 = vpop.xlane.xlu0 %720 }
 0x4ff   :  { %1058 = vrcp.f32 %v721_v45 }
 0x500   :  { %1060 = vrcp.f32 %v1100_v11 }
 0x503   :  { %v752_v4 = vpop.f32.mrf.mxu0 }
 0x505   :  { %v1059_v48 = vpop.eup %1058 }
 0x506   :  { %v823_v49 = vmul.f32 %v1059_v48, %v752_v4  ;;  %v1061_v16 = vpop.eup %1060 }
 0x507   :  { %v503_v2 = vmul.f32 32.0, %v1061_v16  ;;  %vm507_vm3 = vweird.f32 %v1061_v16 }
 0x508   :  { %v827_v50 = vpack.c.bf16 %v823_v49, %v823_v49 }
 0x509   :  { %v504_v18 = vsub.f32 1.0, %v503_v2 }
 0x50a   :  { %1009 = vmatmul.msk.bf16.vlgmr.msrb.gmra.mxu0 %vm182_vm1, %v827_v50 }
 0x50b   :  { %v754_v42 = vpop.f32.mrf.mxu0  ;;  %v505_v51 = vmul.f32 %v1061_v16, %v504_v18 }
 0x50d   :  { %v506_v5 = vadd.f32 %v1061_v16, %v505_v51 }
 0x50f   :  { %v1366_v44 = vsel %vm507_vm3, %v1061_v16, %v506_v5 }
 0x536   :  { %v730_v52 = vpop.xlane.xlu2 %729 }
 0x537   :  { %1062 = vrcp.f32 %v730_v52 }
 0x538   :  { %v727_v56 = vpop.xlane.xlu1 %726 }
 0x53d   :  { %v1063_v60 = vpop.eup %1062 }
 0x53e   :  { %v501_v53 = vpop.xlane.xlu2 %500 }
 0x53f   :  { %v509_v54 = vmul.f32 %v1366_v44, %v501_v53 }
 0x540   :  { %v724_v59 = vpop.xlane.xlu1 %723 }
 0x541   :  { %v510_v55 = vsub.f32 %v498_v37, %v509_v54  ;;  %1064 = vrcp.f32 %v724_v59 }
 0x542   :  { %1066 = vrcp.f32 %v727_v56 }
 0x543   :  { %v511_v57 = vmul.f32 %v510_v55, %v510_v55 }
 0x545   :  { %v512_v58 = vsel %vm81_vm0, %v511_v57, 0.0 }
 0x546   :  { %513 = vadd.xlane.f32.xlu1 %v512_v58 }
 0x547   :  { %v1065_v63 = vpop.eup %1064 }
 0x548   :  { %v1067_v12 = vpop.eup %1066 }
 0x553   :  { %v815_v61 = vpop.f32.mrf.mxu3 }
 0x554   :  { %v826_v62 = vmul.f32 %v1063_v60, %v815_v61 }
 0x555   :  { %v773_v9 = vpop.f32.mrf.mxu1 }
 0x556   :  { %v830_v13 = vpack.c.bf16 %v826_v62, %v826_v62  ;;  %v824_v14 = vmul.f32 %v1065_v63, %v773_v9  ;;  %v794_v15 = vpop.f32.mrf.mxu2 }
 0x557   :  { %v825_v17 = vmul.f32 %v1067_v12, %v794_v15 }
 0x558   :  { %v828_v19 = vpack.c.bf16 %v824_v14, %v824_v14  ;;  %1012 = vmatmul.msk.bf16.vlgmr.msrb.gmra.mxu3 %vm182_vm1, %v830_v13 }
 0x559   :  { %v829_v20 = vpack.c.bf16 %v825_v17, %v825_v17 }
 0x55a   :  { %1010 = vmatmul.msk.bf16.vlgmr.msrb.gmra.mxu1 %vm182_vm1, %v828_v19 }
 0x55b   :  { %v817_v21 = vpop.f32.mrf.mxu3  ;;  %1011 = vmatmul.msk.bf16.vlgmr.msrb.gmra.mxu2 %vm182_vm1, %v829_v20 }
 0x55d   :  { %v775_v22 = vpop.f32.mrf.mxu1 }
 0x55e   :  { %v796_v23 = vpop.f32.mrf.mxu2 }
 0x587   :  { %v843_v24 = vpop.f32.mrf.mxu0 }
 0x588   :  { %v895_v3 = vsel %vm81_vm0, %v843_v24, 0.0 }
 0x58f   :  { %v845_v25 = vpop.f32.mrf.mxu0 }
 0x5b9   :  { %v514_v26 = vpop.xlane.xlu1 %513 }
 0x5ba   :  { %v515_v27 = vmul.f32 %v514_v26, %v1366_v44 }
 0x5bc   :  { %v516_v28 = vadd.f32 1e-05, %v515_v27 }
 0x5be   :  { %1068 = vrsqrt.f32 %v516_v28  ;;  %vm523_vm5 = vweird.f32 %v516_v28 }
 0x5c4   :  { %v1069_v29 = vpop.eup %1068 }
 0x5c5   :  { %v518_v30 = vmul.f32 %v1069_v29, %v516_v28  ;;  %vm524_vm4 = vweird.f32 %v1069_v29 }
 0x5c6   :  { %vm525_vm6 = vmor %vm523_vm5, %vm524_vm4 }
 0x5c7   :  { %v519_v31 = vmul.f32 %v1069_v29, %v518_v30 }
 0x5c9   :  { %v520_v10 = vmul.f32 0.5, %v519_v31 }
 0x5cb   :  { %v521_v33 = vsub.f32 1.5, %v520_v10 }
 0x5cd   :  { %v522_v34 = vmul.f32 %v1069_v29, %v521_v33 }
 0x5cf   :  { %v526_v36 = vsel %vm525_vm6, %v1069_v29, %v522_v34 }
 0x5d0   :  { %v527_v37 = vmul.f32 %v526_v36, %v510_v55 }
 0x5d2   :  { %v531_v39 = vmul.f32 %v1032_v35, %v527_v37 }
 0x5d4   :  { %v535_v41 = vadd.f32 %v1033_v38, %v531_v39 }
 0x5d6   :  { %536 = vst.msk [vmem:[#allocation2] sm:$0xff] %vm81_vm0, %v535_v41 }
 0x5d7   :  { %v859_v43 = vpop.f32.mrf.mxu1 }
 0x5d8   :  { %v896_v0 = vsel %vm81_vm0, %v859_v43, 0.0 }
 0x5d9   :  { %v897_v1 = vadd.f32 %v896_v0, %v895_v3 }
 0x5db   :  { %v891_v32 = vpop.f32.mrf.mxu3 }
 0x5dc   :  { %v900_v45 = vsel %vm81_vm0, %v891_v32, 0.0 }
 0x5de   :  { %v875_v6 = vpop.f32.mrf.mxu2 }
 0x5df   :  { %v898_v46 = vsel %vm81_vm0, %v875_v6, 0.0  ;;  %v861_v47 = vpop.f32.mrf.mxu1 }
 0x5e0   :  { %v899_v7 = vadd.f32 %v898_v46, %v897_v1 }
 0x5e2   :  { %v901_v4 = vadd.f32 %v900_v45, %v899_v7 }
 0x5e3   :  { %v893_v48 = vpop.f32.mrf.mxu3 }
 0x5e4   :  { %v902_v49 = vadd.f32 %v1347_v40, %v901_v4 }
 0x5e6   :  { %v877_v50 = vpop.f32.mrf.mxu2  ;;  %v903_v42 = vadd.f32 %v1299_v8, %v902_v49 }
 0x5e8   :  { %v904_v11 = vsel %vm81_vm0, %v903_v42, 0.0 }
 0x5e9   :  { %905 = vadd.xlane.f32.xlu0 %v904_v11 }
 0x65c   :  { %v906_v16 = vpop.xlane.xlu0 %905 }
 0x65d   :  { %v907_v2 = vmul.f32 %v906_v16, %v1366_v44 }
 0x65f   :  { %v908_v18 = vsub.f32 %v903_v42, %v907_v2 }
 0x661   :  { %v909_v51 = vmul.f32 %v908_v18, %v908_v18 }
 0x663   :  { %v910_v52 = vsel %vm81_vm0, %v909_v51, 0.0 }
 0x664   :  { %911 = vadd.xlane.f32.xlu2 %v910_v52 }
 0x6d7   :  { %v912_v5 = vpop.xlane.xlu2 %911 }
 0x6d8   :  { %v913_v53 = vmul.f32 %v912_v5, %v1366_v44 }
 0x6da   :  { %v914_v54 = vadd.f32 1e-05, %v913_v53 }
 0x6dc   :  { %1070 = vrsqrt.f32 %v914_v54  ;;  %vm921_vm8 = vweird.f32 %v914_v54 }
 0x6e2   :  { %v1071_v40 = vpop.eup %1070 }
 0x6e3   :  { %v916_v55 = vmul.f32 %v1071_v40, %v914_v54  ;;  %vm922_vm7 = vweird.f32 %v1071_v40 }
 0x6e4   :  { %vm923_vm9 = vmor %vm921_vm8, %vm922_vm7 }
 0x6e5   :  { %v917_v56 = vmul.f32 %v1071_v40, %v916_v55 }
 0x6e7   :  { %v918_v8 = vmul.f32 0.5, %v917_v56 }
 0x6e9   :  { %v919_v57 = vsub.f32 1.5, %v918_v8 }
 0x6eb   :  { %v920_v58 = vmul.f32 %v1071_v40, %v919_v57 }
 0x6ed   :  { %v924_v59 = vsel %vm923_vm9, %v1071_v40, %v920_v58 }
 0x6ee   :  { %v925_v60 = vmul.f32 %v924_v59, %v908_v18 }
 0x6f0   :  { %v926_v44 = vmul.f32 %v1032_v35, %v925_v60 }
 0x6f2   :  { %v927_v61 = vadd.f32 %v1033_v38, %v926_v44 }
 0x6f4   :  { %929 = vst.msk [vmem:[#allocation2 + $0x8] sm:$0xff] %vm81_vm0, %v927_v61 }
 0x6f5   :  { %942 = dma.vmem_to_hbm [thread:$0]  %s935_s6, 256, %s937_s1, [#allocation3], %s1102_s19, %s1102_s19, %s1103_s20  }
 0x6f6   :  { %1096 = dma.done.wait [#allocation3], 256  }
 0x6f7   :  { %1097 = vsyncadd [#allocation3], 4294967040 }
 0x6f8   :  { %947 = vsyncpa [#allocation3], 1 }

</bundles_post_ra>
